<compile_context>
chip_gen: v7x
topology: tpu7x:2x2x1
jax: 0.10.0
libtpu: 0.0.40
codegen_flags: <defaults>
</compile_context>

<pallas_src>
import functools

import jax
import jax.numpy as jnp
from jax.experimental import pallas as pl
from jax.experimental.pallas import tpu as pltpu

_LANE = 128
_K_TILE = 1024                          # layer-1 reduction tile for large input_size
_VMEM_DATA_BUDGET = 34 * 1024 * 1024    # row-dependent VMEM budget (v7x-safe)
_VMEM_LIMIT_CAP = 48 * 1024 * 1024      # comfortably under v7x's 64 MiB physical


def _round_up(n, m):
    return ((n + m - 1) // m) * m


def _mlp_kernel(x_ref, w1_ref, b1_ref, w2_ref, b2_ref, w3_ref, b3_ref,
                o_ref, acc_ref, *, k_rem):
    """One (tm x tk) block of x against resident (lane-padded) weights.

    Grid: (row tiles, K tiles). Layer-1 partial products accumulate into an f32
    VMEM scratch; layers 2/3 + the d_out-wide store run on the last K step only.
    """
    k = pl.program_id(1)
    nk = pl.num_programs(1)

    @pl.when(k == 0)
    def _():
        acc_ref[...] = jnp.zeros_like(acc_ref)

    xb = x_ref[...]
    if k_rem:
        # Last K block is ragged: zero columns past the logical input width so
        # stale VMEM contents cannot reach the accumulator (W1's padded rows
        # are exact zeros, so the product of the masked region is exactly 0).
        col = jax.lax.broadcasted_iota(jnp.int32, xb.shape, 1)
        valid = jnp.where(k == nk - 1, k_rem, xb.shape[-1])
        xb = jnp.where(col < valid, xb, jnp.zeros_like(xb))

    # Layer 1 partial product. Cast to the weight dtype in-kernel (bf16 MXU
    # path when weights were prepared as bf16); accumulate in f32.
    acc_ref[...] += jnp.dot(xb.astype(w1_ref.dtype), w1_ref[...],
                            preferred_element_type=jnp.float32)

    @pl.when(k == nk - 1)
    def _():
        h1 = jnp.maximum(acc_ref[...] + b1_ref[...], 0.0)
        h2 = jnp.dot(h1.astype(w2_ref.dtype), w2_ref[...],
                     preferred_element_type=jnp.float32)
        h2 = jnp.maximum(h2 + b2_ref[...], 0.0)
        h3 = jnp.dot(h2.astype(w3_ref.dtype), w3_ref[...],
                     preferred_element_type=jnp.float32)
        h3 = h3 + b3_ref[...]
        # Store only the logical output columns (few masked vst per tile is
        # far cheaper than the 128-lane-padded writeback it replaces).
        o_ref[...] = h3[:, :o_ref.shape[-1]].astype(o_ref.dtype)


def prepare_params(params, compute_dtype=None):
    """Pad / cast the (tiny) weights ONCE so forward calls do no extra XLA passes.

    params: dict with PyTorch-shaped w1,b1,w2,b2,w3,b3.
    compute_dtype: MXU dtype for the weights (e.g. jnp.bfloat16 to halve weight
    HBM traffic / get bf16 MXU throughput); biases and accumulation stay f32.
    Zero padding is exact: relu(0 + 0) = 0 and zero rows/cols contribute nothing.
    """
    w1, b1 = params["w1"], params["b1"]
    w2, b2 = params["w2"], params["b2"]
    w3, b3 = params["w3"], params["b3"]

    d_in, h1 = w1.shape
    h2 = w2.shape[-1]
    d_out = w3.shape[-1]
    w_dtype = jnp.dtype(compute_dtype) if compute_dtype is not None else w1.dtype

    h1p = _round_up(h1, _LANE)
    h2p = _round_up(h2, _LANE)
    d_out_p = _round_up(d_out, _LANE)
    # Pad W1's input dim to a multiple of the K tile when K-tiling kicks in so
    # weight blocks are never ragged (padded rows are exact zeros).
    d_in_p = d_in if d_in <= _K_TILE else _round_up(d_in, _K_TILE)

    return {
        "w1p": jnp.pad(w1, ((0, d_in_p - d_in), (0, h1p - h1))).astype(w_dtype),
        "w2p": jnp.pad(w2, ((0, h1p - h1), (0, h2p - h2))).astype(w_dtype),
        "w3p": jnp.pad(w3, ((0, h2p - h2), (0, d_out_p - d_out))).astype(w_dtype),
        "b1p": jnp.pad(b1.reshape(1, -1), ((0, 0), (0, h1p - h1))).astype(jnp.float32),
        "b2p": jnp.pad(b2.reshape(1, -1), ((0, 0), (0, h2p - h2))).astype(jnp.float32),
        "b3p": jnp.pad(b3.reshape(1, -1), ((0, 0), (0, d_out_p - d_out))).astype(jnp.float32),
        "d_in": d_in, "d_out": d_out, "h1": h1, "h2": h2,
    }


def ex_mlp_forward(x, params, compute_dtype=None, tile_m=2048):
    """x: (..., input_size). params: raw PyTorch-shaped dict OR prepare_params output."""
    prepared = params if "w1p" in params else prepare_params(params, compute_dtype)
    w1p, b1p = prepared["w1p"], prepared["b1p"]
    w2p, b2p = prepared["w2p"], prepared["b2p"]
    w3p, b3p = prepared["w3p"], prepared["b3p"]
    d_in, d_out = prepared["d_in"], prepared["d_out"]
    h1, h2 = prepared["h1"], prepared["h2"]

    lead_shape = x.shape[:-1]
    assert x.shape[-1] == d_in, (x.shape, d_in)
    x2d = x.reshape(-1, d_in)          # NOTE: no dtype cast here (done in-kernel)
    n_rows = x2d.shape[0]
    out_dtype = x.dtype
    x_isz = x2d.dtype.itemsize
    out_isz = jnp.dtype(out_dtype).itemsize

    d_in_p, h1p = w1p.shape
    h2p = w2p.shape[-1]
    d_out_p = w3p.shape[-1]

    # ---- layer-1 reduction (K) tiling -------------------------------------
    if d_in <= _K_TILE:
        tk, nk = d_in, 1
    else:
        tk, nk = _K_TILE, d_in_p // _K_TILE
    k_rem = d_in % tk                   # > 0  =>  last x K-block is ragged

    # ---- row tile selection (VMEM-budgeted, v7x-safe) ----------------------
    w_isz = w1p.dtype.itemsize
    weights_vmem = (2 * (tk * h1p + h1p * h2p + h2p * d_out_p) * w_isz
                    + 2 * (h1p + h2p + d_out_p) * 4)
    per_row = (2 * tk * x_isz           # x double buffer
               + 2 * d_out * out_isz    # out double buffer
               + 4 * h1p * 4)           # f32 acc scratch + h1/h2/h3 spill headroom
    tm_cap = max(8, ((_VMEM_DATA_BUDGET - weights_vmem) // per_row) // 8 * 8)
    tm = max(8, min(tile_m, tm_cap, _round_up(n_rows, 8)))
    # v7x megacore: prefer >= 8 row tiles when there are enough rows to share.
    if n_rows >= 8 * 256 and pl.cdiv(n_rows, tm) < 8:
        tm = max(256, _round_up(pl.cdiv(n_rows, 8), 8))

    grid = (pl.cdiv(n_rows, tm), nk)

    vmem_need = (weights_vmem
                 + 2 * tm * tk * x_isz
                 + 2 * tm * d_out * out_isz
                 + 4 * tm * h1p * 4)
    vmem_limit = int(min(max(vmem_need + (4 << 20), 16 << 20), _VMEM_LIMIT_CAP))

    cost = pl.CostEstimate(
        flops=2 * n_rows * (d_in * h1 + h1 * h2 + h2 * d_out),
        transcendentals=0,
        bytes_accessed=(n_rows * d_in * x_isz
                        + sum(int(a.size) * a.dtype.itemsize
                              for a in (w1p, w2p, w3p, b1p, b2p, b3p))
                        + n_rows * d_out * out_isz),
    )

    kernel = functools.partial(_mlp_kernel, k_rem=k_rem)

    out = pl.pallas_call(
        kernel,
        out_shape=jax.ShapeDtypeStruct((n_rows, d_out), out_dtype),
        grid_spec=pltpu.PrefetchScalarGridSpec(
            num_scalar_prefetch=0,
            grid=grid,
            in_specs=[
                pl.BlockSpec((tm, tk), lambda i, k: (i, k)),      # x: streamed
                pl.BlockSpec((tk, h1p), lambda i, k: (k, 0)),     # W1: K-streamed
                pl.BlockSpec((1, h1p), lambda i, k: (0, 0)),      # b1 \
                pl.BlockSpec((h1p, h2p), lambda i, k: (0, 0)),    # W2  \ tiny,
                pl.BlockSpec((1, h2p), lambda i, k: (0, 0)),      # b2  / VMEM-
                pl.BlockSpec((h2p, d_out_p), lambda i, k: (0, 0)),# W3 /  resident
                pl.BlockSpec((1, d_out_p), lambda i, k: (0, 0)),  # b3
            ],
            out_specs=pl.BlockSpec((tm, d_out), lambda i, k: (i, 0)),
            scratch_shapes=[pltpu.VMEM((tm, h1p), jnp.float32)],
        ),
        compiler_params=pltpu.CompilerParams(
            dimension_semantics=("parallel", "arbitrary"),
            vmem_limit_bytes=vmem_limit,
        ),
        cost_estimate=cost,
    )(x2d, w1p, b1p, w2p, b2p, w3p, b3p)

    return out.reshape(*lead_shape, d_out)


def init_params(key, input_size, output_size, dtype=jnp.float32):
    """Deterministic Xavier-normal init matching tr.nn.init.xavier_normal_."""
    def xavier_normal(k, fan_in, fan_out):
        std = (2.0 / (fan_in + fan_out)) ** 0.5
        return (jax.random.normal(k, (fan_in, fan_out)) * std).astype(dtype)

    k1, k2, k3 = jax.random.split(key, 3)
    return {
        "w1": xavier_normal(k1, input_size, 128),
        "b1": jnp.zeros((128,), dtype),
        "w2": xavier_normal(k2, 128, 24),
        "b2": jnp.zeros((24,), dtype),
        "w3": xavier_normal(k3, 24, output_size),
        "b3": jnp.zeros((output_size,), dtype),
    }


if __name__ == "__main__":
    key = jax.random.PRNGKey(0)
    k_x, k_p, k_x2, k_p2 = jax.random.split(key, 4)

    batch, seq, input_size = 2, 8, 32
    output_size = 2

    x = jax.random.normal(k_x, (batch, seq, input_size), dtype=jnp.float32)
    params = init_params(k_p, input_size, output_size)

    def jax_ref(xv, p):
        a = jnp.maximum(xv @ p["w1"] + p["b1"], 0.0)
        a = jnp.maximum(a @ p["w2"] + p["b2"], 0.0)
        return a @ p["w3"] + p["b3"]

    ref = jax_ref(x, params)

    # f32 path (weights padded/cast once, reused across calls).
    prepared_f32 = prepare_params(params)
    out = jax.block_until_ready(ex_mlp_forward(x, prepared_f32))
    assert out.shape == (batch, seq, output_size), out.shape
    assert jnp.allclose(out, ref, atol=1e-5, rtol=1e-5)

    # bf16-weight path: x stays f32 in HBM, cast in-kernel; f32 accumulation.
    prepared_bf16 = prepare_params(params, compute_dtype=jnp.bfloat16)
    out_bf16 = jax.block_until_ready(ex_mlp_forward(x, prepared_bf16))
    assert out_bf16.shape == (batch, seq, output_size), out_bf16.shape
    assert jnp.allclose(out_bf16, ref, atol=7e-2, rtol=7e-2)

    # Large input_size exercises the layer-1 K-tiling + ragged-K masking path.
    big_in = 1300                       # > _K_TILE and not a multiple of it
    x_big = jax.random.normal(k_x2, (3, seq, big_in), dtype=jnp.float32)
    params_big = init_params(k_p2, big_in, output_size)
    ref_big = jax_ref(x_big, params_big)
    out_big = jax.block_until_ready(ex_mlp_forward(x_big, prepare_params(params_big)))
    assert out_big.shape == (3, seq, output_size), out_big.shape
    assert jnp.allclose(out_big, ref_big, atol=5e-2, rtol=5e-2)

    print("KERNEL_OK")
</pallas_src>

<mosaic_0001>
module attributes {stable_mosaic.version = 11 : i64} {
  func.func @_mlp_kernel(%arg0: i32, %arg1: i32, %arg2: memref<16x32xf32, #tpu.memory_space<vmem>>, %arg3: memref<32x128xf32, #tpu.memory_space<vmem>>, %arg4: memref<1x128xf32, #tpu.memory_space<vmem>>, %arg5: memref<128x128xf32, #tpu.memory_space<vmem>>, %arg6: memref<1x128xf32, #tpu.memory_space<vmem>>, %arg7: memref<128x128xf32, #tpu.memory_space<vmem>>, %arg8: memref<1x128xf32, #tpu.memory_space<vmem>>, %arg9: memref<16x2xf32, #tpu.memory_space<vmem>>, %arg10: memref<16x128xf32, #tpu.memory_space<vmem>>) attributes {dimension_semantics = [#tpu.dimension_semantics<parallel>, #tpu.dimension_semantics<arbitrary>], iteration_bounds = array<i64: 1, 1>, scalar_prefetch = 0 : i64, scratch_operands = 1 : i64, tpu.core_type = #tpu.core_type<tc>, window_params = [{transform_indices = @transform_0, window_bounds = array<i64: 16, 32>}, {transform_indices = @transform_1, window_bounds = array<i64: 32, 128>}, {pipeline_mode = #tpu.pipeline_mode<synchronous>, transform_indices = @transform_2, window_bounds = array<i64: 1, 128>}, {pipeline_mode = #tpu.pipeline_mode<synchronous>, transform_indices = @transform_3, window_bounds = array<i64: 128, 128>}, {pipeline_mode = #tpu.pipeline_mode<synchronous>, transform_indices = @transform_4, window_bounds = array<i64: 1, 128>}, {pipeline_mode = #tpu.pipeline_mode<synchronous>, transform_indices = @transform_5, window_bounds = array<i64: 128, 128>}, {pipeline_mode = #tpu.pipeline_mode<synchronous>, transform_indices = @transform_6, window_bounds = array<i64: 1, 128>}, {transform_indices = @transform_7, window_bounds = array<i64: 16, 2>}]} {
    %c0_i32 = arith.constant 0 : i32
    %0 = arith.cmpi eq, %arg1, %c0_i32 : i32
    %1 = arith.extui %0 : i1 to i32
    %c0_i32_0 = arith.constant 0 : i32
    %2 = arith.cmpi ne, %1, %c0_i32_0 : i32
    scf.if %2 {
      %cst_10 = arith.constant 0.000000e+00 : f32
      %12 = vector.broadcast %cst_10 : f32 to vector<16x128xf32>
      %c0_11 = arith.constant 0 : index
      %c0_12 = arith.constant 0 : index
      %13 = vector.load %arg10[%c0_11, %c0_12] : memref<16x128xf32, #tpu.memory_space<vmem>>, vector<16x128xf32>
      tpu.vector_store %arg10[%c0_11, %c0_12], %12 {strides = array<i32>} : memref<16x128xf32, #tpu.memory_space<vmem>>, vector<16x128xf32>,
    } else {
    }
    %c0 = arith.constant 0 : index
    %c0_1 = arith.constant 0 : index
    %3 = vector.load %arg2[%c0, %c0_1] : memref<16x32xf32, #tpu.memory_space<vmem>>, vector<16x32xf32>
    %c0_2 = arith.constant 0 : index
    %c0_3 = arith.constant 0 : index
    %4 = vector.load %arg10[%c0_2, %c0_3] : memref<16x128xf32, #tpu.memory_space<vmem>>, vector<16x128xf32>
    %c0_4 = arith.constant 0 : index
    %c0_5 = arith.constant 0 : index
    %5 = vector.load %arg3[%c0_4, %c0_5] : memref<32x128xf32, #tpu.memory_space<vmem>>, vector<32x128xf32>
    %cst = arith.constant dense<0.000000e+00> : vector<16x128xf32>
    %6 = tpu.matmul %3, %5, %cst {dimension_numbers = #tpu.dot_dimension_numbers<[1], [0], [0], [1], [0, 0, 1, 1], [], []>} : vector<16x32xf32>, vector<32x128xf32>, vector<16x128xf32> -> vector<16x128xf32>
    %7 = arith.addf %4, %6 : vector<16x128xf32>
    %c0_6 = arith.constant 0 : index
    %c0_7 = arith.constant 0 : index
    %8 = vector.load %arg10[%c0_6, %c0_7] : memref<16x128xf32, #tpu.memory_space<vmem>>, vector<16x128xf32>
    tpu.vector_store %arg10[%c0_6, %c0_7], %7 {strides = array<i32>} : memref<16x128xf32, #tpu.memory_space<vmem>>, vector<16x128xf32>,
    %c0_i32_8 = arith.constant 0 : i32
    %9 = arith.cmpi eq, %arg1, %c0_i32_8 : i32
    %10 = arith.extui %9 : i1 to i32
    %c0_i32_9 = arith.constant 0 : i32
    %11 = arith.cmpi ne, %10, %c0_i32_9 : i32
    scf.if %11 {
      %c0_10 = arith.constant 0 : index
      %c0_11 = arith.constant 0 : index
      %12 = vector.load %arg10[%c0_10, %c0_11] : memref<16x128xf32, #tpu.memory_space<vmem>>, vector<16x128xf32>
      %c0_12 = arith.constant 0 : index
      %c0_13 = arith.constant 0 : index
      %13 = vector.load %arg4[%c0_12, %c0_13] : memref<1x128xf32, #tpu.memory_space<vmem>>, vector<1x128xf32>
      %14 = vector.broadcast %13 : vector<1x128xf32> to vector<16x128xf32>
      %15 = arith.addf %12, %14 : vector<16x128xf32>
      %cst_14 = arith.constant 0.000000e+00 : f32
      %16 = vector.broadcast %cst_14 : f32 to vector<16x128xf32>
      %17 = arith.maximumf %15, %16 : vector<16x128xf32>
      %c0_15 = arith.constant 0 : index
      %c0_16 = arith.constant 0 : index
      %18 = vector.load %arg5[%c0_15, %c0_16] : memref<128x128xf32, #tpu.memory_space<vmem>>, vector<128x128xf32>
      %cst_17 = arith.constant dense<0.000000e+00> : vector<16x128xf32>
      %19 = tpu.matmul %17, %18, %cst_17 {dimension_numbers = #tpu.dot_dimension_numbers<[1], [0], [0], [1], [0, 0, 1, 1], [], []>} : vector<16x128xf32>, vector<128x128xf32>, vector<16x128xf32> -> vector<16x128xf32>
      %c0_18 = arith.constant 0 : index
      %c0_19 = arith.constant 0 : index
      %20 = vector.load %arg6[%c0_18, %c0_19] : memref<1x128xf32, #tpu.memory_space<vmem>>, vector<1x128xf32>
      %21 = vector.broadcast %20 : vector<1x128xf32> to vector<16x128xf32>
      %22 = arith.addf %19, %21 : vector<16x128xf32>
      %cst_20 = arith.constant 0.000000e+00 : f32
      %23 = vector.broadcast %cst_20 : f32 to vector<16x128xf32>
      %24 = arith.maximumf %22, %23 : vector<16x128xf32>
      %c0_21 = arith.constant 0 : index
      %c0_22 = arith.constant 0 : index
      %25 = vector.load %arg7[%c0_21, %c0_22] : memref<128x128xf32, #tpu.memory_space<vmem>>, vector<128x128xf32>
      %cst_23 = arith.constant dense<0.000000e+00> : vector<16x128xf32>
      %26 = tpu.matmul %24, %25, %cst_23 {dimension_numbers = #tpu.dot_dimension_numbers<[1], [0], [0], [1], [0, 0, 1, 1], [], []>} : vector<16x128xf32>, vector<128x128xf32>, vector<16x128xf32> -> vector<16x128xf32>
      %c0_24 = arith.constant 0 : index
      %c0_25 = arith.constant 0 : index
      %27 = vector.load %arg8[%c0_24, %c0_25] : memref<1x128xf32, #tpu.memory_space<vmem>>, vector<1x128xf32>
      %28 = vector.broadcast %27 : vector<1x128xf32> to vector<16x128xf32>
      %29 = arith.addf %26, %28 : vector<16x128xf32>
      %30 = vector.extract_strided_slice %29 {offsets = [0, 0], sizes = [16, 2], strides = [1, 1]} : vector<16x128xf32> to vector<16x2xf32>
      %c0_26 = arith.constant 0 : index
      %c0_27 = arith.constant 0 : index
      %31 = vector.load %arg9[%c0_26, %c0_27] : memref<16x2xf32, #tpu.memory_space<vmem>>, vector<16x2xf32>
      tpu.vector_store %arg9[%c0_26, %c0_27], %30 {strides = array<i32>} : memref<16x2xf32, #tpu.memory_space<vmem>>, vector<16x2xf32>,
    } else {
    }
    return
  }
  func.func @transform_0(%arg0: i32, %arg1: i32) -> (i32, i32) {
    %c0_i32 = arith.constant 0 : i32
    return %arg0, %arg1 : i32, i32
  }
  func.func @transform_1(%arg0: i32, %arg1: i32) -> (i32, i32) {
    %c0_i32 = arith.constant 0 : i32
    %c0_i32_0 = arith.constant 0 : i32
    return %arg1, %c0_i32 : i32, i32
  }
  func.func @transform_2(%arg0: i32, %arg1: i32) -> (i32, i32) {
    %c0_i32 = arith.constant 0 : i32
    %c0_i32_0 = arith.constant 0 : i32
    %c0_i32_1 = arith.constant 0 : i32
    return %c0_i32, %c0_i32_0 : i32, i32
  }
  func.func @transform_3(%arg0: i32, %arg1: i32) -> (i32, i32) {
    %c0_i32 = arith.constant 0 : i32
    %c0_i32_0 = arith.constant 0 : i32
    %c0_i32_1 = arith.constant 0 : i32
    return %c0_i32, %c0_i32_0 : i32, i32
  }
  func.func @transform_4(%arg0: i32, %arg1: i32) -> (i32, i32) {
    %c0_i32 = arith.constant 0 : i32
    %c0_i32_0 = arith.constant 0 : i32
    %c0_i32_1 = arith.constant 0 : i32
    return %c0_i32, %c0_i32_0 : i32, i32
  }
  func.func @transform_5(%arg0: i32, %arg1: i32) -> (i32, i32) {
    %c0_i32 = arith.constant 0 : i32
    %c0_i32_0 = arith.constant 0 : i32
    %c0_i32_1 = arith.constant 0 : i32
    return %c0_i32, %c0_i32_0 : i32, i32
  }
  func.func @transform_6(%arg0: i32, %arg1: i32) -> (i32, i32) {
    %c0_i32 = arith.constant 0 : i32
    %c0_i32_0 = arith.constant 0 : i32
    %c0_i32_1 = arith.constant 0 : i32
    return %c0_i32, %c0_i32_0 : i32, i32
  }
  func.func @transform_7(%arg0: i32, %arg1: i32) -> (i32, i32) {
    %c0_i32 = arith.constant 0 : i32
    %c0_i32_0 = arith.constant 0 : i32
    return %arg0, %c0_i32 : i32, i32
  }
}

</mosaic_0001>

<bundles_post_ra>
// kernel: tpu_custom_call.1
= control target key start
LH: loop header
LB: loop body
LE: loop exit
PB: predicated region body
PF: predicated region fallthrough
CT: control target
= control target key end

     0   :  { %12 = vsyncpa [#allocation4], 0  ;;  %s842_s0 = inlined_call_operand.hbm [shape: f32[16,32], index: 0, kind: input, shape index: {}]   ;;  %s843_s1 = inlined_call_operand.hbm [shape: f32[32,128], index: 1, kind: input, shape index: {}]   ;;  %s844_s2 = inlined_call_operand.vmem [shape: f32[1,128], index: 2, kind: input, shape index: {}]   ;;  %s845_s3 = inlined_call_operand.hbm [shape: f32[128,128], index: 3, kind: input, shape index: {}]   ;;  %s846_s4 = inlined_call_operand.vmem [shape: f32[1,128], index: 4, kind: input, shape index: {}]   ;;  %s847_s5 = inlined_call_operand.hbm [shape: f32[128,128], index: 5, kind: input, shape index: {}]   ;;  %s848_s6 = inlined_call_operand.vmem [shape: f32[1,128], index: 6, kind: input, shape index: {}]   ;;  %s849_s7 = inlined_call_operand.vmem [shape: f32[16,2], index: 7, kind: output, shape index: {}]  }
   0x1   :  { %13 = vsyncpa [#allocation6], 0 }
   0x2   :  { %14 = vsyncpa [#allocation9], 0  ;;  %s705_s24 = smov [#allocation5]   ;;  %s706_s26 = smov [#allocation3]  }
   0x3   :  { %s32_s25 = sshll.u32 %s705_s24, 4  ;;  %s20_s27 = sshll.u32 %s706_s26, 4  ;;  %s33_s25 = int_to_ptr.vmem [resolvable:$true] %s32_s25  ;;  %s751_s27 = int_to_ptr.vmem [resolvable:$true] %s20_s27 }
   0x4   :  { %s611_s30 = scalar_lea.hbm %s843_s1, 512 }
   0x5   :  { %p612_p0 = scmp.ne.s32.totalorder %s843_s1, %s611_s30  ;;  %p615_p1 = scmp.lt.u32.totalorder %s611_s30, %s843_s1 }
   0x7   :  { %p617_p2 = pnand %p615_p1, %p612_p0 }
   0x9   :  { %620 = shalt.err (!%p617_p2)
}
   0xa   :  { %s621_s12 = scalar_lea.vmem %s33_s25, 512  ;;  %p626_p4 = scmp.lt.s32.totalorder %s33_s25, %s33_s25 }
   0xb   :  { %p622_p3 = scmp.ne.s32.totalorder %s33_s25, %s621_s12  ;;  %p627_p5 = scmp.lt.s32.totalorder %s621_s12, %s621_s12 }
   0xd   :  { %p628_p6 = por %p627_p5, %p626_p4 }
   0xf   :  { %p629_p7 = pnand %p628_p6, %p622_p3 }
  0x11   :  { %632 = shalt.err (!%p629_p7)
}
  0x12   :  { %s707_s13 = smov 128   ;;  %s708_s14 = smov 8  }
  0x13   :  { %38 = dma.hbm_to_vmem [thread:$0]  %s843_s1, 512, %s33_s25, [#allocation6], %s707_s13, %s707_s13, %s708_s14  }
  0x14   :  { %s633_s19 = scalar_lea.hbm %s842_s0, 256 }
  0x15   :  { %p634_p8 = scmp.ne.s32.totalorder %s842_s0, %s633_s19  ;;  %p637_p9 = scmp.lt.u32.totalorder %s633_s19, %s842_s0 }
  0x17   :  { %p639_p10 = pnand %p637_p9, %p634_p8 }
  0x19   :  { %642 = shalt.err (!%p639_p10)
}
  0x1a   :  { %s643_s24 = scalar_lea.vmem %s751_s27, 256  ;;  %p648_p12 = scmp.lt.s32.totalorder %s751_s27, %s751_s27 }
  0x1b   :  { %p644_p11 = scmp.ne.s32.totalorder %s751_s27, %s643_s24  ;;  %p649_p13 = scmp.lt.s32.totalorder %s643_s24, %s643_s24 }
  0x1d   :  { %p650_p0 = por %p649_p13, %p648_p12 }
  0x1f   :  { %p651_p1 = pnand %p650_p0, %p644_p11 }
  0x21   :  { %654 = shalt.err (!%p651_p1)
}
  0x22   :  { %26 = dma.hbm_to_vmem [thread:$0]  %s842_s0, 256, %s751_s27, [#allocation4], %s707_s13, %s707_s13, %s708_s14  }
  0x23   :  { %s709_s26 = smov [#allocation7]   ;;  %s710_s29 = smov [#allocation8]  }
  0x24   :  { %s46_s28 = sshll.u32 %s709_s26, 4  ;;  %s60_s30 = sshll.u32 %s710_s29, 4  ;;  %s47_s28 = int_to_ptr.vmem [resolvable:$true] %s46_s28  ;;  %s788_s30 = int_to_ptr.vmem [resolvable:$true] %s60_s30 }
  0x25   :  { %s655_s10 = scalar_lea.hbm %s845_s3, 2048 }
  0x26   :  { %p656_p2 = scmp.ne.s32.totalorder %s845_s3, %s655_s10  ;;  %p659_p3 = scmp.lt.u32.totalorder %s655_s10, %s845_s3 }
  0x28   :  { %p661_p4 = pnand %p659_p3, %p656_p2 }
  0x2a   :  { %664 = shalt.err (!%p661_p4)
}
  0x2b   :  { %s665_s0 = scalar_lea.vmem %s47_s28, 2048  ;;  %p670_p6 = scmp.lt.s32.totalorder %s47_s28, %s47_s28 }
  0x2c   :  { %p666_p5 = scmp.ne.s32.totalorder %s47_s28, %s665_s0  ;;  %p671_p7 = scmp.lt.s32.totalorder %s665_s0, %s665_s0 }
  0x2e   :  { %p672_p8 = por %p671_p7, %p670_p6 }
  0x30   :  { %p673_p9 = pnand %p672_p8, %p666_p5 }
  0x32   :  { %676 = shalt.err (!%p673_p9)
}
  0x33   :  { %52 = dma.hbm_to_vmem [thread:$0]  %s845_s3, 2048, %s47_s28, [#allocation6], %s707_s13, %s707_s13, %s708_s14  }
  0x34   :  { %s677_s20 = scalar_lea.hbm %s847_s5, 2048 }
  0x35   :  { %p678_p10 = scmp.ne.s32.totalorder %s847_s5, %s677_s20  ;;  %p681_p11 = scmp.lt.u32.totalorder %s677_s20, %s847_s5 }
  0x37   :  { %p683_p12 = pnand %p681_p11, %p678_p10 }
  0x39   :  { %686 = shalt.err (!%p683_p12)
}
  0x3a   :  { %s687_s1 = scalar_lea.vmem %s788_s30, 2048  ;;  %p692_p0 = scmp.lt.s32.totalorder %s788_s30, %s788_s30 }
  0x3b   :  { %p688_p13 = scmp.ne.s32.totalorder %s788_s30, %s687_s1  ;;  %p693_p1 = scmp.lt.s32.totalorder %s687_s1, %s687_s1 }
  0x3d   :  { %p694_p2 = por %p693_p1, %p692_p0 }
  0x3f   :  { %p695_p3 = pnand %p694_p2, %p688_p13 }
  0x41   :  { %698 = shalt.err (!%p695_p3)
}
  0x42   :  { %66 = dma.hbm_to_vmem [thread:$0]  %s847_s5, 2048, %s788_s30, [#allocation9], %s707_s13, %s707_s13, %s708_s14  }
  0x43   :  { %699 = dma.done.wait [#allocation4], 256  }
  0x44   :  { %700 = vsyncadd [#allocation4], 4294967040 }
  0x45   :  { %701 = dma.done.wait [#allocation6], 2560  }
  0x46   :  { %702 = vsyncadd [#allocation6], 4294964736 }
  0x47   :  { %703 = dma.done.wait [#allocation9], 2048  }
  0x48   :  { %704 = vsyncadd [#allocation9], 4294965248  ;;  %vm95_vm0 = vcmask 261120   ;;  %v91_v0 = vld [vmem:[#allocation5] sm:$0xff]  ;;  %v92_v1 = vld [vmem:[#allocation5 + $0x8] sm:$0xff]  ;;  %vm395_vm1 = vcmask 15360  }
  0x49   :  { %v93_v2 = vld [vmem:[#allocation5 + $0x10] sm:$0xff]  ;;  %v533_v3 = vpack.c.bf16 %v92_v1, %v91_v0  ;;  %v94_v4 = vld [vmem:[#allocation5 + $0x18] sm:$0xff]  ;;  %v197_v7 = vld [vmem:[#allocation7] sm:$0xff] }
  0x4a   :  { %v87_v5 = vld [vmem:[#allocation3] sm:$0xff]  ;;  %v537_v6 = vpack.c.bf16 %v94_v4, %v93_v2  ;;  %v198_v8 = vld [vmem:[#allocation7 + $0x8] sm:$0xff]  ;;  %v200_v11 = vld [vmem:[#allocation7 + $0x18] sm:$0xff] }
  0x4b   :  { %460 = vmatprep.mubr.msk.f32.mxu0 %vm95_vm0, %v87_v5  ;;  %v199_v9 = vld [vmem:[#allocation7 + $0x10] sm:$0xff]  ;;  %534 = vmatprep.subr.bf16.mxu0 %v533_v3  ;;  %v541_v10 = vpack.c.bf16 %v198_v8, %v197_v7  ;;  %v201_v13 = vld [vmem:[#allocation7 + $0x20] sm:$0xff]  ;;  %v202_v14 = vld [vmem:[#allocation7 + $0x28] sm:$0xff] }
  0x4c   :  { %536 = vmatpush3.bf16.msra.mxu0 %v533_v3  ;;  %v545_v12 = vpack.c.bf16 %v200_v11, %v199_v9  ;;  %v549_v15 = vpack.c.bf16 %v202_v14, %v201_v13  ;;  %v88_v16 = vld [vmem:[#allocation3 + $0x8] sm:$0xff]  ;;  %v203_v17 = vld [vmem:[#allocation7 + $0x30] sm:$0xff]  ;;  %v205_v20 = vld [vmem:[#allocation7 + $0x40] sm:$0xff] }
  0x4d   :  { %538 = vmatprep.subr.bf16.mxu0 %v537_v6  ;;  %542 = vmatprep.subr.bf16.mxu1 %v541_v10  ;;  %v204_v18 = vld [vmem:[#allocation7 + $0x38] sm:$0xff]  ;;  %v206_v21 = vld [vmem:[#allocation7 + $0x48] sm:$0xff]  ;;  %v207_v23 = vld [vmem:[#allocation7 + $0x50] sm:$0xff] }
  0x4e   :  { %544 = vmatpush3.bf16.msra.mxu1 %v541_v10  ;;  %v553_v19 = vpack.c.bf16 %v204_v18, %v203_v17  ;;  %v557_v22 = vpack.c.bf16 %v206_v21, %v205_v20  ;;  %v208_v24 = vld [vmem:[#allocation7 + $0x58] sm:$0xff]  ;;  %v209_v26 = vld [vmem:[#allocation7 + $0x60] sm:$0xff]  ;;  %v210_v27 = vld [vmem:[#allocation7 + $0x68] sm:$0xff] }
  0x4f   :  { %546 = vmatprep.subr.bf16.mxu1 %v545_v12  ;;  %v561_v25 = vpack.c.bf16 %v208_v24, %v207_v23  ;;  %v565_v28 = vpack.c.bf16 %v210_v27, %v209_v26  ;;  %v211_v29 = vld [vmem:[#allocation7 + $0x70] sm:$0xff]  ;;  %v212_v30 = vld [vmem:[#allocation7 + $0x78] sm:$0xff]  ;;  %v297_v32 = vld [vmem:[#allocation8] sm:$0xff] }
  0x50   :  { %540 = vmatpush3.bf16.msra.mxu0 %v537_v6  ;;  %v569_v31 = vpack.c.bf16 %v212_v30, %v211_v29  ;;  %v298_v33 = vld [vmem:[#allocation8 + $0x8] sm:$0xff]  ;;  %v299_v34 = vld [vmem:[#allocation8 + $0x10] sm:$0xff]  ;;  %v300_v36 = vld [vmem:[#allocation8 + $0x18] sm:$0xff] }
  0x51   :  { %v573_v35 = vpack.c.bf16 %v298_v33, %v297_v32  ;;  %v577_v37 = vpack.c.bf16 %v300_v36, %v299_v34  ;;  %v301_v38 = vld [vmem:[#allocation8 + $0x20] sm:$0xff]  ;;  %v302_v39 = vld [vmem:[#allocation8 + $0x28] sm:$0xff]  ;;  %v303_v41 = vld [vmem:[#allocation8 + $0x30] sm:$0xff] }
  0x52   :  { %548 = vmatpush3.bf16.msra.mxu1 %v545_v12  ;;  %v581_v40 = vpack.c.bf16 %v302_v39, %v301_v38  ;;  %v304_v42 = vld [vmem:[#allocation8 + $0x38] sm:$0xff]  ;;  %v305_v44 = vld [vmem:[#allocation8 + $0x40] sm:$0xff]  ;;  %v306_v45 = vld [vmem:[#allocation8 + $0x48] sm:$0xff] }
  0x53   :  { %461 = vmatmul.mubr.msk.f32.vlgmr.msra.gmra.mrb[0].mxu0 %vm95_vm0, %v88_v16  ;;  %550 = vmatprep.subr.bf16.mxu1 %v549_v15  ;;  %v585_v43 = vpack.c.bf16 %v304_v42, %v303_v41  ;;  %v589_v46 = vpack.c.bf16 %v306_v45, %v305_v44  ;;  %v307_v47 = vld [vmem:[#allocation8 + $0x50] sm:$0xff]  ;;  %v308_v48 = vld [vmem:[#allocation8 + $0x58] sm:$0xff]  ;;  %v309_v50 = vld [vmem:[#allocation8 + $0x60] sm:$0xff] }
  0x54   :  { %574 = vmatprep.subr.bf16.mxu0 %v573_v35  ;;  %v593_v49 = vpack.c.bf16 %v308_v48, %v307_v47  ;;  %v310_v51 = vld [vmem:[#allocation8 + $0x68] sm:$0xff]  ;;  %v407_v53 = vld [vmem:[%s844_s2] ss:$0 sm:$0xff]  ;;  %v312_v61 = vld [vmem:[#allocation8 + $0x78] sm:$0xff] }
  0x55   :  { %576 = vmatpush3.bf16.msra.mxu0 %v573_v35  ;;  %v597_v52 = vpack.c.bf16 %v310_v51, %v309_v50  ;;  %v311_v60 = vld [vmem:[#allocation8 + $0x70] sm:$0xff] }
  0x56   :  { %552 = vmatpush3.bf16.msra.mxu1 %v549_v15  ;;  %578 = vmatprep.subr.bf16.mxu0 %v577_v37  ;;  %v601_v62 = vpack.c.bf16 %v312_v61, %v311_v60  ;;  %v408_v63 = vld [vmem:[%s846_s4] ss:$0 sm:$0xff] }
  0x57   :  { %554 = vmatprep.subr.bf16.mxu1 %v553_v19  ;;  %v409_v6 = vld [vmem:[%s848_s6] ss:$0 sm:$0xff] }
  0x59   :  { %580 = vmatpush3.bf16.msra.mxu0 %v577_v37 }
  0x5a   :  { %556 = vmatpush3.bf16.msra.mxu1 %v553_v19  ;;  %582 = vmatprep.subr.bf16.mxu0 %v581_v40 }
  0x5b   :  { %558 = vmatprep.subr.bf16.mxu1 %v557_v22 }
  0x5d   :  { %584 = vmatpush3.bf16.msra.mxu0 %v581_v40 }
  0x5e   :  { %560 = vmatpush3.bf16.msra.mxu1 %v557_v22  ;;  %586 = vmatprep.subr.bf16.mxu0 %v585_v43 }
  0x5f   :  { %562 = vmatprep.subr.bf16.mxu1 %v561_v25 }
  0x61   :  { %588 = vmatpush3.bf16.msra.mxu0 %v585_v43 }
  0x62   :  { %564 = vmatpush3.bf16.msra.mxu1 %v561_v25  ;;  %590 = vmatprep.subr.bf16.mxu0 %v589_v46 }
  0x63   :  { %566 = vmatprep.subr.bf16.mxu1 %v565_v28 }
  0x65   :  { %592 = vmatpush3.bf16.msra.mxu0 %v589_v46 }
  0x66   :  { %568 = vmatpush3.bf16.msra.mxu1 %v565_v28  ;;  %594 = vmatprep.subr.bf16.mxu0 %v593_v49 }
  0x67   :  { %570 = vmatprep.subr.bf16.mxu1 %v569_v31 }
  0x69   :  { %596 = vmatpush3.bf16.msra.mxu0 %v593_v49 }
  0x6a   :  { %572 = vmatpush3.bf16.msra.mxu1 %v569_v31  ;;  %598 = vmatprep.subr.bf16.mxu0 %v597_v52 }
  0x6d   :  { %600 = vmatpush3.bf16.msra.mxu0 %v597_v52 }
  0x6e   :  { %602 = vmatprep.subr.bf16.mxu0 %v601_v62 }
  0x71   :  { %604 = vmatpush3.bf16.msra.mxu0 %v601_v62 }
 0x126   :  { %v462_v54 = vpop.f32.mrb[0].mxu0 }
 0x127   :  { %v194_v55 = vadd.f32 %v462_v54, %v407_v53  ;;  %v168_v56 = vpop.f32.mrb[1].mxu0 }
 0x128   :  { %v193_v57 = vadd.f32 %v407_v53, %v168_v56 }
 0x129   :  { %v196_v59 = vmax.f32 %v194_v55, 0.0 }
 0x12a   :  { %v195_v58 = vmax.f32 %v193_v57, 0.0 }
 0x12c   :  { %495 = vmatprep.mubr.f32.mxu1 %v195_v58 }
 0x12d   :  { %496 = vmatmul.mubr.f32.vlgmr.msra.gmra.mrb[0].mxu1 %v196_v59 }
 0x200   :  { %v497_v0 = vpop.f32.mrb[0].mxu1 }
 0x201   :  { %v292_v1 = vadd.f32 %v497_v0, %v408_v63  ;;  %v286_v2 = vpop.f32.mrb[1].mxu1 }
 0x202   :  { %v287_v3 = vadd.f32 %v408_v63, %v286_v2 }
 0x203   :  { %v296_v5 = vmax.f32 %v292_v1, 0.0 }
 0x204   :  { %v295_v4 = vmax.f32 %v287_v3, 0.0 }
 0x206   :  { %530 = vmatprep.mubr.f32.mxu0 %v295_v4 }
 0x207   :  { %531 = vmatmul.mubr.f32.vlgmr.msra.gmra.mrb[2].mxu0 %v296_v5 }
 0x2da   :  { %v532_v7 = vpop.f32.mrb[2].mxu0 }
 0x2db   :  { %v392_v8 = vadd.f32 %v532_v7, %v409_v6  ;;  %v386_v9 = vpop.f32.mrb[3].mxu0 }
 0x2dc   :  { %v387_v10 = vadd.f32 %v409_v6, %v386_v9 }
 0x2dd   :  { %397 = vst.msk [vmem:[%s849_s7 + $0x8] sm:$0xff] %vm395_vm1, %v392_v8 }
 0x2de   :  { %396 = vst.msk [vmem:[%s849_s7] sm:$0xff] %vm395_vm1, %v387_v10 }
 0x2df   :  { %402 = vsyncpa [#allocation4], 1 }
 0x2e0   :  { %403 = vsyncpa [#allocation6], 1 }
 0x2e1   :  { %404 = vsyncpa [#allocation9], 1 }

</bundles_post_ra>
